<compile_context>
chip_gen: v5e
topology: v5e:2x2
jax: 0.10.0
libtpu: 0.0.40
codegen_flags: <defaults>
</compile_context>

<pallas_src>
import jax
import jax.numpy as jnp
from jax.experimental import pallas as pl
from jax.experimental.pallas import tpu as pltpu


LANE = 128            # pixels per lane-column (minor dim, multiple of 128)
KDIM = 16             # fc1 contraction dim: 3 real features padded to one
                      # full bf16 sublane tile
H1 = 16               # fc1 output features
H2 = 32               # fc2 output features

MIN_BLOCK_COLS = 32   # don't create blocks smaller than 32*128 = 4K pixels
MAX_BLOCK_COLS = 128  # up to 128*128 = 16K pixels per grid step


def _round_up(x, m):
    return ((x + m - 1) // m) * m


def _mlp_kernel(x_ref, w1_ref, b1_ref, w2_ref, b2_ref, w3_ref, b3_ref, o_ref):
    """3->16->32->1 MLP on a (16 features x tile_p pixels) slab.

    fc1/fc2 run on the MXU (bf16 in, f32 accumulate); bias/ReLU/fc3 scaling on
    the VPU; the 32-sublane fc3 reduce on the XLU; tanh on the EUP; the output
    is a lane-dense (1, tile_p) row.
    """
    # fc1: (16, 16) @ (16, P) -> (16, P), then bias + ReLU in f32.
    h1 = jnp.dot(w1_ref[...], x_ref[...], preferred_element_type=jnp.float32)
    h1 = jnp.maximum(h1 + b1_ref[...], 0.0)

    # fc2: (32, 16) @ (16, P) -> (32, P), then bias + ReLU in f32.
    h2 = jnp.dot(w2_ref[...], h1.astype(jnp.bfloat16),
                 preferred_element_type=jnp.float32)
    h2 = jnp.maximum(h2 + b2_ref[...], 0.0)

    # fc3 (32 -> 1): scale by the w3 column, reduce over the 32 feature
    # sublanes, add the bias and apply tanh.
    out = jnp.sum(h2 * w3_ref[...], axis=0, keepdims=True) + b3_ref[0]
    o_ref[...] = jnp.tanh(out)


def _mlp_pallas(x, kparams, *, block_cols, blocks):
    """Runs the MLP over a feature-major (KDIM, n_pad) bf16 slab."""
    w1t, b1, w2t, b2, w3, b3 = kparams
    kdim, n_pad = x.shape
    tile_p = block_cols * LANE
    assert kdim == KDIM and n_pad == blocks * tile_p

    def full(arr):
        # whole (tiny) weight array resident in VMEM every grid step
        return pl.BlockSpec(arr.shape, lambda i: (0, 0))

    return pl.pallas_call(
        _mlp_kernel,
        out_shape=jax.ShapeDtypeStruct((1, n_pad), jnp.float32),
        grid_spec=pltpu.PrefetchScalarGridSpec(
            num_scalar_prefetch=0,
            grid=(blocks,),
            in_specs=[
                pl.BlockSpec((KDIM, tile_p), lambda i: (0, i)),      # X slab
                full(w1t), full(b1),                                 # fc1
                full(w2t), full(b2),                                 # fc2
                full(w3),                                            # fc3 w
                pl.BlockSpec(memory_space=pltpu.MemorySpace.SMEM),   # fc3 b
            ],
            out_specs=pl.BlockSpec((1, tile_p), lambda i: (0, i)),
        ),
        compiler_params=pltpu.CompilerParams(
            dimension_semantics=("parallel",),
            vmem_limit_bytes=32 * 1024 * 1024,
        ),
    )(x, w1t, b1, w2t, b2, w3, b3)


def _prep_params(params):
    """Kernel-side weight layout: transposed, fc1 K padded to 16, bf16 matmul
    operands, f32 biases / fc3 column."""
    w1, b1, w2, b2, w3, b3 = params
    w1t = jnp.pad(w1.T.astype(jnp.bfloat16), ((0, 0), (0, KDIM - 3)))  # (16,16)
    w2t = w2.T.astype(jnp.bfloat16)                                    # (32,16)
    return (w1t,
            b1.reshape(H1, 1).astype(jnp.float32),
            w2t,
            b2.reshape(H2, 1).astype(jnp.float32),
            w3.reshape(H2, 1).astype(jnp.float32),
            b3.reshape(1).astype(jnp.float32))


def embbed_forward(P, M, params, rand_key):
    """Pallas implementation of Embbed.forward(P, M)."""
    a, b, c, d = P.shape
    N = a * b * c * d

    # torch.rand_like(P): uniform [0, 1).  Generated in the wrapper so the run
    # is reproducible against the pure-JAX references.
    # TODO(synk): generate in-kernel with pltpu.prng_seed +
    # pltpu.prng_random_bits to drop the separate RNG kernel; results then no
    # longer bit-match jax.random.
    rand = jax.random.uniform(rand_key, (N,), dtype=jnp.float32)
    feats = jnp.stack(
        [rand, P.reshape(-1).astype(jnp.float32),
         M.reshape(-1).astype(jnp.float32)], axis=0)         # (3, N)

    # Grid heuristic: blocks of <= MAX_BLOCK_COLS 128-pixel columns; once the
    # problem is big enough, force an even step count >= 4 so both v7x
    # TensorCores get balanced work.
    cols = pl.cdiv(N, LANE)
    blocks = pl.cdiv(cols, MAX_BLOCK_COLS)
    if cols >= 4 * MIN_BLOCK_COLS:
        blocks = _round_up(max(blocks, 4), 2)
    block_cols = pl.cdiv(cols, blocks)
    n_pad = block_cols * blocks * LANE

    # Feature-major bf16 slab: rows [rand, P, M] + zero rows up to one full
    # bf16 sublane tile; pixel axis zero-padded to a whole number of blocks.
    x = jnp.pad(feats.astype(jnp.bfloat16), ((0, KDIM - 3), (0, n_pad - N)))

    out = _mlp_pallas(x, _prep_params(params),
                      block_cols=block_cols, blocks=blocks)
    return out[0, :N].reshape(a, b, c, d)


def init_transformer_net_params(key):
    """Deterministic synthetic params matching TransformerNet layer shapes.
    (PyTorch-style uniform(-1/sqrt(fan_in), 1/sqrt(fan_in)) init.)"""
    ks = jax.random.split(key, 6)

    def uniform(k, shape, fan_in):
        bound = 1.0 / (fan_in ** 0.5)
        return jax.random.uniform(k, shape, jnp.float32, -bound, bound)

    w1 = uniform(ks[0], (3, H1), 3.0)
    b1 = uniform(ks[1], (H1,), 3.0)
    w2 = uniform(ks[2], (H1, H2), 16.0)
    b2 = uniform(ks[3], (H2,), 16.0)
    w3 = uniform(ks[4], (H2,), 32.0)   # Linear(32, 1) weight, flattened
    b3 = uniform(ks[5], (1,), 32.0)
    return (w1, b1, w2, b2, w3, b3)


def _reference_f32(P, M, params, rand_key):
    """Pure-f32 reference (the PyTorch module's numerics)."""
    a, b, c, d = P.shape
    N = a * b * c * d
    rand = jax.random.uniform(rand_key, (N,), dtype=jnp.float32)
    x = jnp.stack([rand, P.reshape(-1), M.reshape(-1)], axis=1)   # (N, 3)
    w1, b1, w2, b2, w3, b3 = params
    hi = jax.lax.Precision.HIGHEST
    h = jnp.maximum(jnp.dot(x, w1, precision=hi) + b1, 0.0)
    h = jnp.maximum(jnp.dot(h, w2, precision=hi) + b2, 0.0)
    out = jnp.tanh(jnp.dot(h, w3, precision=hi) + b3[0])
    return out.reshape(a, b, c, d)


def _reference_bf16(P, M, params, rand_key):
    """Reference with the kernel's numerics (bf16 matmul operands, f32 acc,
    fc3/bias/ReLU/tanh in f32)."""
    a, b, c, d = P.shape
    N = a * b * c * d
    rand = jax.random.uniform(rand_key, (N,), dtype=jnp.float32)
    x = jnp.stack([rand, P.reshape(-1), M.reshape(-1)],
                  axis=1).astype(jnp.bfloat16)
    w1, b1, w2, b2, w3, b3 = params
    h = jnp.maximum(
        jnp.dot(x, w1.astype(jnp.bfloat16),
                preferred_element_type=jnp.float32) + b1, 0.0)
    h = jnp.maximum(
        jnp.dot(h.astype(jnp.bfloat16), w2.astype(jnp.bfloat16),
                preferred_element_type=jnp.float32) + b2, 0.0)
    out = jnp.tanh(
        jnp.dot(h, w3, precision=jax.lax.Precision.HIGHEST) + b3[0])
    return out.reshape(a, b, c, d)


if __name__ == "__main__":
    key = jax.random.PRNGKey(0)
    k_param, k_P, k_M, k_rand = jax.random.split(key, 4)

    # Small NCHW shapes: (a, b, c, d) = (2, 4, 16, 16) -> N = 2048 pixels.
    P = jax.random.uniform(k_P, (2, 4, 16, 16), dtype=jnp.float32)
    M = jax.random.uniform(k_M, (2, 4, 16, 16), dtype=jnp.float32)

    # TODO(synk): the original module loads pretrained weights from
    # IBD/step_fun.pkl; deterministic synthetic init with identical layer
    # shapes (Linear(3,16), Linear(16,32), Linear(32,1)) is used instead.
    params = init_transformer_net_params(k_param)

    out = jax.block_until_ready(embbed_forward(P, M, params, k_rand))
    assert out.shape == (2, 4, 16, 16)

    # Strict check: same numerics as the kernel (bf16 matmul operands, f32
    # accumulate) -> only accumulation-order / tanh-impl differences remain.
    ref_bf16 = _reference_bf16(P, M, params, k_rand)
    err_strict = float(jnp.max(jnp.abs(out - ref_bf16)))
    assert err_strict < 1e-4, err_strict

    # Loose sanity check against the pure-f32 module semantics (bf16 matmul
    # operands cost ~1e-2 absolute on outputs in (-1, 1)).
    ref_f32 = _reference_f32(P, M, params, k_rand)
    err_f32 = float(jnp.max(jnp.abs(out - ref_f32)))
    assert err_f32 < 5e-2, err_f32

    print("KERNEL_OK")
</pallas_src>

<mosaic_0001>
module attributes {stable_mosaic.version = 11 : i64} {
  func.func @_mlp_kernel(%arg0: i32, %arg1: memref<16x2048xbf16, #tpu.memory_space<vmem>>, %arg2: memref<16x16xbf16, #tpu.memory_space<vmem>>, %arg3: memref<16x1xf32, #tpu.memory_space<vmem>>, %arg4: memref<32x16xbf16, #tpu.memory_space<vmem>>, %arg5: memref<32x1xf32, #tpu.memory_space<vmem>>, %arg6: memref<32x1xf32, #tpu.memory_space<vmem>>, %arg7: memref<1xf32, #tpu.memory_space<smem>>, %arg8: memref<1x2048xf32, #tpu.memory_space<vmem>>) attributes {dimension_semantics = [#tpu.dimension_semantics<parallel>], iteration_bounds = array<i64: 1>, scalar_prefetch = 0 : i64, scratch_operands = 0 : i64, tpu.core_type = #tpu.core_type<tc>, window_params = [{transform_indices = @transform_0, window_bounds = array<i64: 16, 2048>}, {pipeline_mode = #tpu.pipeline_mode<synchronous>, transform_indices = @transform_1, window_bounds = array<i64: 16, 16>}, {pipeline_mode = #tpu.pipeline_mode<synchronous>, transform_indices = @transform_2, window_bounds = array<i64: 16, 1>}, {pipeline_mode = #tpu.pipeline_mode<synchronous>, transform_indices = @transform_3, window_bounds = array<i64: 32, 16>}, {pipeline_mode = #tpu.pipeline_mode<synchronous>, transform_indices = @transform_4, window_bounds = array<i64: 32, 1>}, {pipeline_mode = #tpu.pipeline_mode<synchronous>, transform_indices = @transform_5, window_bounds = array<i64: 32, 1>}, {transform_indices = @transform_6, window_bounds = array<i64: 1>}, {transform_indices = @transform_7, window_bounds = array<i64: 1, 2048>}]} {
    %c0 = arith.constant 0 : index
    %c0_0 = arith.constant 0 : index
    %0 = vector.load %arg2[%c0, %c0_0] : memref<16x16xbf16, #tpu.memory_space<vmem>>, vector<16x16xbf16>
    %c0_1 = arith.constant 0 : index
    %c0_2 = arith.constant 0 : index
    %1 = vector.load %arg1[%c0_1, %c0_2] : memref<16x2048xbf16, #tpu.memory_space<vmem>>, vector<16x2048xbf16>
    %cst = arith.constant dense<0.000000e+00> : vector<16x2048xf32>
    %2 = tpu.matmul %0, %1, %cst {dimension_numbers = #tpu.dot_dimension_numbers<[1], [0], [0], [1], [0, 0, 1, 1], [], []>} : vector<16x16xbf16>, vector<16x2048xbf16>, vector<16x2048xf32> -> vector<16x2048xf32>
    %c0_3 = arith.constant 0 : index
    %c0_4 = arith.constant 0 : index
    %3 = vector.load %arg3[%c0_3, %c0_4] : memref<16x1xf32, #tpu.memory_space<vmem>>, vector<16x1xf32>
    %4 = vector.broadcast %3 : vector<16x1xf32> to vector<16x2048xf32>
    %5 = arith.addf %2, %4 : vector<16x2048xf32>
    %cst_5 = arith.constant 0.000000e+00 : f32
    %6 = vector.broadcast %cst_5 : f32 to vector<16x2048xf32>
    %7 = arith.maximumf %5, %6 : vector<16x2048xf32>
    %c0_6 = arith.constant 0 : index
    %c0_7 = arith.constant 0 : index
    %8 = vector.load %arg4[%c0_6, %c0_7] : memref<32x16xbf16, #tpu.memory_space<vmem>>, vector<32x16xbf16>
    %9 = arith.truncf %7 : vector<16x2048xf32> to vector<16x2048xbf16>
    %cst_8 = arith.constant dense<0.000000e+00> : vector<32x2048xf32>
    %10 = tpu.matmul %8, %9, %cst_8 {dimension_numbers = #tpu.dot_dimension_numbers<[1], [0], [0], [1], [0, 0, 1, 1], [], []>} : vector<32x16xbf16>, vector<16x2048xbf16>, vector<32x2048xf32> -> vector<32x2048xf32>
    %c0_9 = arith.constant 0 : index
    %c0_10 = arith.constant 0 : index
    %11 = vector.load %arg5[%c0_9, %c0_10] : memref<32x1xf32, #tpu.memory_space<vmem>>, vector<32x1xf32>
    %12 = vector.broadcast %11 : vector<32x1xf32> to vector<32x2048xf32>
    %13 = arith.addf %10, %12 : vector<32x2048xf32>
    %cst_11 = arith.constant 0.000000e+00 : f32
    %14 = vector.broadcast %cst_11 : f32 to vector<32x2048xf32>
    %15 = arith.maximumf %13, %14 : vector<32x2048xf32>
    %c0_12 = arith.constant 0 : index
    %c0_13 = arith.constant 0 : index
    %16 = vector.load %arg6[%c0_12, %c0_13] : memref<32x1xf32, #tpu.memory_space<vmem>>, vector<32x1xf32>
    %17 = vector.broadcast %16 : vector<32x1xf32> to vector<32x2048xf32>
    %18 = arith.mulf %15, %17 : vector<32x2048xf32>
    %cst_14 = arith.constant dense<0.000000e+00> : vector<2048xf32>
    %19 = vector.multi_reduction <add>, %18, %cst_14 [0] : vector<32x2048xf32> to vector<2048xf32>
    %20 = vector.shape_cast %19 : vector<2048xf32> to vector<1x2048xf32>
    %c0_15 = arith.constant 0 : index
    %21 = memref.load %arg7[%c0_15] : memref<1xf32, #tpu.memory_space<smem>>
    %22 = vector.broadcast %21 : f32 to vector<1x2048xf32>
    %23 = arith.addf %20, %22 : vector<1x2048xf32>
    %24 = math.tanh %23 : vector<1x2048xf32>
    %c0_16 = arith.constant 0 : index
    %c0_17 = arith.constant 0 : index
    %25 = vector.load %arg8[%c0_16, %c0_17] : memref<1x2048xf32, #tpu.memory_space<vmem>>, vector<1x2048xf32>
    tpu.vector_store %arg8[%c0_16, %c0_17], %24 {strides = array<i32>} : memref<1x2048xf32, #tpu.memory_space<vmem>>, vector<1x2048xf32>,
    return
  }
  func.func @transform_0(%arg0: i32) -> (i32, i32) {
    %c0_i32 = arith.constant 0 : i32
    %c0_i32_0 = arith.constant 0 : i32
    return %c0_i32, %arg0 : i32, i32
  }
  func.func @transform_1(%arg0: i32) -> (i32, i32) {
    %c0_i32 = arith.constant 0 : i32
    %c0_i32_0 = arith.constant 0 : i32
    %c0_i32_1 = arith.constant 0 : i32
    return %c0_i32, %c0_i32_0 : i32, i32
  }
  func.func @transform_2(%arg0: i32) -> (i32, i32) {
    %c0_i32 = arith.constant 0 : i32
    %c0_i32_0 = arith.constant 0 : i32
    %c0_i32_1 = arith.constant 0 : i32
    return %c0_i32, %c0_i32_0 : i32, i32
  }
  func.func @transform_3(%arg0: i32) -> (i32, i32) {
    %c0_i32 = arith.constant 0 : i32
    %c0_i32_0 = arith.constant 0 : i32
    %c0_i32_1 = arith.constant 0 : i32
    return %c0_i32, %c0_i32_0 : i32, i32
  }
  func.func @transform_4(%arg0: i32) -> (i32, i32) {
    %c0_i32 = arith.constant 0 : i32
    %c0_i32_0 = arith.constant 0 : i32
    %c0_i32_1 = arith.constant 0 : i32
    return %c0_i32, %c0_i32_0 : i32, i32
  }
  func.func @transform_5(%arg0: i32) -> (i32, i32) {
    %c0_i32 = arith.constant 0 : i32
    %c0_i32_0 = arith.constant 0 : i32
    %c0_i32_1 = arith.constant 0 : i32
    return %c0_i32, %c0_i32_0 : i32, i32
  }
  func.func @transform_6(%arg0: i32) -> i32 {
    %c0_i32 = arith.constant 0 : i32
    %c0_i32_0 = arith.constant 0 : i32
    return %c0_i32 : i32
  }
  func.func @transform_7(%arg0: i32) -> (i32, i32) {
    %c0_i32 = arith.constant 0 : i32
    %c0_i32_0 = arith.constant 0 : i32
    return %c0_i32, %arg0 : i32, i32
  }
}

</mosaic_0001>

<bundles_post_ra>
// kernel: tpu_custom_call.1
= control target key start
LH: loop header
LB: loop body
LE: loop exit
PB: predicated region body
PF: predicated region fallthrough
CT: control target
= control target key end

     0   :  { %13 = vsyncpa [#allocation4], 0  ;;  %s1837_s0 = inlined_call_operand.hbm [shape: bf16[16,2048], index: 0, kind: input, shape index: {}]   ;;  %s1838_s1 = inlined_call_operand.vmem [shape: bf16[16,16], index: 1, kind: input, shape index: {}]   ;;  %s1839_s2 = inlined_call_operand.vmem [shape: f32[16,1], index: 2, kind: input, shape index: {}]   ;;  %s1840_s3 = inlined_call_operand.vmem [shape: bf16[32,16], index: 3, kind: input, shape index: {}]   ;;  %s1841_s4 = inlined_call_operand.vmem [shape: f32[32,1], index: 4, kind: input, shape index: {}]   ;;  %s1842_s5 = inlined_call_operand.vmem [shape: f32[32,1], index: 5, kind: input, shape index: {}]   ;;  %s1843_s6 = inlined_call_operand.<no memory space> [shape: f32[1], index: 6, kind: input, shape index: {}]   ;;  %s1844_s7 = inlined_call_operand.hbm [shape: f32[1,2048], index: 7, kind: output, shape index: {}]  }
   0x1   :  { %14 = vsyncpa [#allocation5], 0  ;;  %s19_s26 = sshll.u32 %s1837_s0, 4  ;;  %s1421_s27 = smov [#allocation3]   ;;  %s20_s26 = int_to_ptr.hbm [resolvable:$true] %s19_s26 }
   0x2   :  { %s21_s28 = sshll.u32 %s1421_s27, 4  ;;  %s1422_s29 = smov 1024   ;;  %s22_s28 = int_to_ptr.vmem [resolvable:$true] %s21_s28 }
   0x3   :  { %s1423_s30 = smov 64  }
   0x4   :  { %27 = dma.hbm_to_vmem [thread:$0]  %s20_s26, 2048, %s22_s28, [#allocation4], %s1422_s29, %s1422_s29, %s1423_s30  }
   0x5   :  { %1417 = dma.done.wait [#allocation4], 2048  }
   0x6   :  { %1418 = vsyncadd [#allocation4], 4294965248  ;;  %v1424_v0 = vmov 0   ;;  %v63_v1 = vld [vmem:[%s1839_s2] sm:$0xff]  ;;  %v1200_v7 = vld [vmem:[#allocation3 + $0x8] sm:$0xf] }
   0x7   :  { %1334 = vset.pattern.permute.xlu0 %v1424_v0  ;;  %1335 = vset.pattern.permute.xlu1 %v1424_v0  ;;  %v1192_v2 = vld [vmem:[#allocation3] sm:$0xf]  ;;  %v1311_v5 = vld [vmem:[#allocation3 + $0x4] sm:$0xf]  ;;  %v1320_v9 = vld [vmem:[#allocation3 + $0x44] sm:$0xf0] }
   0x8   :  { %1336 = vset.pattern.permute.xlu2 %v1424_v0  ;;  %v1319_v3 = vld [vmem:[#allocation3 + $0x3c] sm:$0xf0]  ;;  %67 = vperm.xlu0 %1334, %v63_v1   ;;  %v1194_v6 = vld [vmem:[#allocation3 + $0x40] sm:$0xf0]  ;;  %v1312_v10 = vld [vmem:[#allocation3 + $0xc] sm:$0xf]  ;;  %v1201_v12 = vor.u32 %v1320_v9, %v1200_v7 }
   0x9   :  { %v1193_v4 = vor.u32 %v1319_v3, %v1192_v2  ;;  %v1197_v8 = vor.u32 %v1311_v5, %v1194_v6  ;;  %v1202_v11 = vld [vmem:[#allocation3 + $0x48] sm:$0xf0]  ;;  %v1475_v14 = vld [vmem:[%s1838_s1] sm:$0xff]  ;;  %vm160_vm0 = vcmask 130048   ;;  %v1208_v15 = vld [vmem:[#allocation3 + $0x10] sm:$0xf] }
   0xa   :  { %v1205_v13 = vor.u32 %v1312_v10, %v1202_v11  ;;  %v1321_v16 = vld [vmem:[#allocation3 + $0x4c] sm:$0xf0]  ;;  %v1313_v17 = vld [vmem:[#allocation3 + $0x14] sm:$0xf]  ;;  %199 = vmatpush.bf16.msra.mxu2 %v1201_v12  ;;  %v1216_v20 = vld [vmem:[#allocation3 + $0x18] sm:$0xf] }
   0xb   :  { %171 = vmatpush.bf16.msra.mxu0 %v1193_v4  ;;  %185 = vmatpush.bf16.msra.mxu1 %v1197_v8  ;;  %v1209_v18 = vor.u32 %v1321_v16, %v1208_v15  ;;  %v1210_v19 = vld [vmem:[#allocation3 + $0x50] sm:$0xf0]  ;;  %v1322_v21 = vld [vmem:[#allocation3 + $0x54] sm:$0xf0]  ;;  %v64_v22 = vld [vmem:[%s1839_s2 + $0x8] sm:$0xff]  ;;  %vm1144_vm1 = vcmask 1040384  }
   0xc   :  { %213 = vmatpush.bf16.msra.mxu3 %v1205_v13  ;;  %v1213_v23 = vor.u32 %v1313_v17, %v1210_v19  ;;  %v1217_v24 = vor.u32 %v1322_v21, %v1216_v20  ;;  %v1314_v25 = vld [vmem:[#allocation3 + $0x1c] sm:$0xf]  ;;  %v1224_v28 = vld [vmem:[#allocation3 + $0x20] sm:$0xf]  ;;  %v1315_v30 = vld [vmem:[#allocation3 + $0x24] sm:$0xf] }
   0xd   :  { %v1218_v26 = vld [vmem:[#allocation3 + $0x58] sm:$0xf0]  ;;  %v1323_v29 = vld [vmem:[#allocation3 + $0x5c] sm:$0xf0]  ;;  %1256 = vmatmul.msk.bf16.vlgmr.msra.gmra.mxu2 %vm160_vm0, %v1475_v14  ;;  %v1226_v32 = vld [vmem:[#allocation3 + $0x60] sm:$0xf0] }
   0xe   :  { %1254 = vmatmul.msk.bf16.vlgmr.msra.gmra.mxu0 %vm160_vm0, %v1475_v14  ;;  %1255 = vmatmul.msk.bf16.vlgmr.msra.gmra.mxu1 %vm160_vm0, %v1475_v14  ;;  %v1221_v27 = vor.u32 %v1314_v25, %v1218_v26  ;;  %v1225_v31 = vor.u32 %v1323_v29, %v1224_v28  ;;  %v1232_v33 = vld [vmem:[#allocation3 + $0x28] sm:$0xf]  ;;  %v1229_v35 = vor.u32 %v1315_v30, %v1226_v32  ;;  %v1316_v37 = vld [vmem:[#allocation3 + $0x2c] sm:$0xf]  ;;  %v848_v40 = vld [vmem:[%s1842_s5] sm:$0xff]  ;;  %vm1146_vm2 = vcmask 1042434  }
   0xf   :  { %227 = vmatpush.bf16.msrb.mxu0 %v1209_v18  ;;  %1257 = vmatmul.msk.bf16.vlgmr.msra.gmra.mxu3 %vm160_vm0, %v1475_v14  ;;  %v1324_v34 = vld [vmem:[#allocation3 + $0x64] sm:$0xf0]  ;;  %v1234_v38 = vld [vmem:[#allocation3 + $0x68] sm:$0xf0]  ;;  %v1240_v41 = vld [vmem:[#allocation3 + $0x30] sm:$0xf] }
  0x10   :  { %72 = vperm.xlu0 %1334, %v64_v22   ;;  %241 = vmatpush.bf16.msrb.mxu1 %v1213_v23  ;;  %v1233_v36 = vor.u32 %v1324_v34, %v1232_v33  ;;  %v1237_v39 = vor.u32 %v1316_v37, %v1234_v38  ;;  %v1325_v42 = vld [vmem:[#allocation3 + $0x6c] sm:$0xf0]  ;;  %v1317_v43 = vld [vmem:[#allocation3 + $0x34] sm:$0xf]  ;;  %v1248_v45 = vld [vmem:[#allocation3 + $0x38] sm:$0xf] }
  0x11   :  { %255 = vmatpush.bf16.msrb.mxu2 %v1217_v24  ;;  %269 = vmatpush.bf16.msrb.mxu3 %v1221_v27  ;;  %v1242_v44 = vld [vmem:[#allocation3 + $0x70] sm:$0xf0]  ;;  %v1241_v46 = vor.u32 %v1325_v42, %v1240_v41  ;;  %v1326_v47 = vld [vmem:[#allocation3 + $0x74] sm:$0xf0]  ;;  %v1318_v48 = vld [vmem:[#allocation3 + $0x3c] sm:$0xf] }
  0x12   :  { %v1250_v49 = vld [vmem:[#allocation3 + $0x78] sm:$0xf0]  ;;  %v1245_v50 = vor.u32 %v1317_v43, %v1242_v44  ;;  %v1249_v52 = vor.u32 %v1326_v47, %v1248_v45  ;;  %v440_v54 = vld [vmem:[%s1841_s4] sm:$0xff]  ;;  %v441_v58 = vld [vmem:[%s1841_s4 + $0x8] sm:$0xff]  ;;  %vm1150_vm3 = vcmask 1044484   ;;  %vm1148_vm4 = vcmask 1041408  }
  0x13   :  { %283 = vmatpush.bf16.msra.mxu0 %v1225_v31  ;;  %v851_v51 = vld [vmem:[%s1842_s5 + $0x18] sm:$0xff]  ;;  %v1253_v53 = vor.u32 %v1318_v48, %v1250_v49  ;;  %446 = vperm.xlu1 %1335, %v440_v54   ;;  %v849_v3 = vld [vmem:[%s1842_s5 + $0x8] sm:$0xff]  ;;  %v1540_v13 = vld [vmem:[%s1840_s3] sm:$0xff]  ;;  %vm1152_vm5 = vcmask 1046534   ;;  %vm1154_vm6 = vcmask 1045508   ;;  %vm1156_vm7 = vcmask 1043456  }
  0x14   :  { %297 = vmatpush.bf16.msra.mxu1 %v1229_v35  ;;  %v442_v33 = vld [vmem:[%s1841_s4 + $0x10] sm:$0xff]  ;;  %v1564_v43 = vld [vmem:[%s1840_s3 + $0x8] sm:$0xff]  ;;  %s1176_s0 = sshll.u32 %s1844_s7, 4  ;;  %s1177_s0 = int_to_ptr.hbm [resolvable:$true] %s1176_s0 }
  0x15   :  { %311 = vmatpush.bf16.msra.mxu2 %v1233_v36  ;;  %325 = vmatpush.bf16.msra.mxu3 %v1237_v39 }
  0x16   :  { %456 = vperm.xlu2 %1336, %v442_v33  }
  0x18   :  { %854 = vperm.xlu0 %1334, %v848_v40  }
  0x1b   :  { %451 = vperm.xlu1 %1335, %v441_v58  }
  0x1d   :  { %1260 = vmatmul.msk.bf16.vlgmr.msrb.gmra.mxu2 %vm160_vm0, %v1475_v14 }
  0x1e   :  { %1258 = vmatmul.msk.bf16.vlgmr.msrb.gmra.mxu0 %vm160_vm0, %v1475_v14  ;;  %1259 = vmatmul.msk.bf16.vlgmr.msrb.gmra.mxu1 %vm160_vm0, %v1475_v14 }
  0x1f   :  { %339 = vmatpush.bf16.msrb.mxu0 %v1241_v46  ;;  %1261 = vmatmul.msk.bf16.vlgmr.msrb.gmra.mxu3 %vm160_vm0, %v1475_v14 }
  0x20   :  { %869 = vperm.xlu0 %1334, %v851_v51   ;;  %353 = vmatpush.bf16.msrb.mxu1 %v1245_v50  ;;  %v443_v50 = vld [vmem:[%s1841_s4 + $0x18] sm:$0xff] }
  0x21   :  { %367 = vmatpush.bf16.msrb.mxu2 %v1249_v52  ;;  %381 = vmatpush.bf16.msrb.mxu3 %v1253_v53 }
  0x22   :  { %461 = vperm.xlu2 %1336, %v443_v50  }
  0x23   :  { %859 = vperm.xlu1 %1335, %v849_v3  }
  0x2d   :  { %1264 = vmatmul.msk.bf16.vlgmr.msra.gmra.mxu2 %vm160_vm0, %v1475_v14 }
  0x2e   :  { %1262 = vmatmul.msk.bf16.vlgmr.msra.gmra.mxu0 %vm160_vm0, %v1475_v14  ;;  %1263 = vmatmul.msk.bf16.vlgmr.msra.gmra.mxu1 %vm160_vm0, %v1475_v14 }
  0x2f   :  { %1265 = vmatmul.msk.bf16.vlgmr.msra.gmra.mxu3 %vm160_vm0, %v1475_v14 }
  0x3d   :  { %1268 = vmatmul.msk.bf16.vlgmr.msrb.gmra.mxu2 %vm160_vm0, %v1475_v14 }
  0x3e   :  { %1266 = vmatmul.msk.bf16.vlgmr.msrb.gmra.mxu0 %vm160_vm0, %v1475_v14  ;;  %1267 = vmatmul.msk.bf16.vlgmr.msrb.gmra.mxu1 %vm160_vm0, %v1475_v14 }
  0x3f   :  { %1269 = vmatmul.msk.bf16.vlgmr.msrb.gmra.mxu3 %vm160_vm0, %v1475_v14 }
  0x7a   :  { %v1521_v55 = vpop.permute.xlu0 %67 }
  0x82   :  { %v1527_v62 = vpop.permute.xlu0 %72 }
  0x8b   :  { %v173_v56 = vpop.f32.mrf.mxu0  ;;  %v187_v57 = vpop.f32.mrf.mxu1 }
  0x8c   :  { %v174_v59 = vadd.f32 %v173_v56, %v1521_v55  ;;  %v188_v63 = vadd.f32 %v187_v57, %v1521_v55 }
  0x8e   :  { %v388_v5 = vmax.f32 %v174_v59, 0.0  ;;  %v389_v7 = vmax.f32 %v188_v63, 0.0 }
  0x90   :  { %v201_v60 = vpop.f32.mrf.mxu2 }
  0x91   :  { %v202_v10 = vadd.f32 %v201_v60, %v1521_v55 }
  0x92   :  { %v215_v61 = vpop.f32.mrf.mxu3 }
  0x93   :  { %v175_v0 = vpop.f32.mrf.mxu0  ;;  %v189_v2 = vpop.f32.mrf.mxu1  ;;  %v216_v11 = vadd.f32 %v215_v61, %v1521_v55  ;;  %v390_v20 = vmax.f32 %v202_v10, 0.0 }
  0x94   :  { %v176_v1 = vadd.f32 %v175_v0, %v1527_v62  ;;  %v190_v4 = vadd.f32 %v189_v2, %v1527_v62  ;;  %v850_v2 = vld [vmem:[%s1842_s5 + $0x10] sm:$0xff] }
  0x95   :  { %v391_v21 = vmax.f32 %v216_v11, 0.0  ;;  %864 = vperm.xlu2 %1336, %v850_v2  }
  0x96   :  { %v404_v6 = vmax.f32 %v176_v1, 0.0  ;;  %v405_v8 = vmax.f32 %v190_v4, 0.0 }
  0x98   :  { %v424_v9 = vpack.c.bf16 %v404_v6, %v388_v5  ;;  %v425_v12 = vpack.c.bf16 %v405_v8, %v389_v7  ;;  %v203_v14 = vpop.f32.mrf.mxu2 }
  0x99   :  { %v204_v16 = vadd.f32 %v203_v14, %v1527_v62 }
  0x9a   :  { %v217_v15 = vpop.f32.mrf.mxu3  ;;  %487 = vmatpush.bf16.msra.mxu0 %v424_v9  ;;  %506 = vmatpush.bf16.msra.mxu1 %v425_v12 }
  0x9b   :  { %v218_v17 = vadd.f32 %v217_v15, %v1527_v62  ;;  %v229_v18 = vpop.f32.mrf.mxu0  ;;  %v243_v19 = vpop.f32.mrf.mxu1  ;;  %v406_v22 = vmax.f32 %v204_v16, 0.0 }
  0x9c   :  { %v230_v26 = vadd.f32 %v229_v18, %v1521_v55  ;;  %v244_v29 = vadd.f32 %v243_v19, %v1521_v55 }
  0x9d   :  { %v407_v23 = vmax.f32 %v218_v17, 0.0  ;;  %1278 = vmatmul.msk.bf16.vlgmr.msra.gmra.mxu0 %vm160_vm0, %v1540_v13  ;;  %1280 = vmatmul.msk.bf16.vlgmr.msra.gmra.mxu1 %vm160_vm0, %v1540_v13  ;;  %v426_v24 = vpack.c.bf16 %v406_v22, %v390_v20 }
  0x9e   :  { %v392_v35 = vmax.f32 %v230_v26, 0.0  ;;  %v393_v37 = vmax.f32 %v244_v29, 0.0 }
  0x9f   :  { %v427_v25 = vpack.c.bf16 %v407_v23, %v391_v21  ;;  %525 = vmatpush.bf16.msra.mxu2 %v426_v24 }
  0xa0   :  { %v257_v27 = vpop.f32.mrf.mxu2 }
  0xa1   :  { %544 = vmatpush.bf16.msra.mxu3 %v427_v25  ;;  %v258_v40 = vadd.f32 %v257_v27, %v1521_v55 }
  0xa2   :  { %v271_v28 = vpop.f32.mrf.mxu3  ;;  %1282 = vmatmul.msk.bf16.vlgmr.msra.gmra.mxu2 %vm160_vm0, %v1540_v13 }
  0xa3   :  { %v231_v30 = vpop.f32.mrf.mxu0  ;;  %v245_v32 = vpop.f32.mrf.mxu1  ;;  %v272_v41 = vadd.f32 %v271_v28, %v1521_v55  ;;  %v394_v51 = vmax.f32 %v258_v40, 0.0 }
  0xa4   :  { %v232_v31 = vadd.f32 %v231_v30, %v1527_v62  ;;  %1284 = vmatmul.msk.bf16.vlgmr.msra.gmra.mxu3 %vm160_vm0, %v1540_v13  ;;  %v246_v34 = vadd.f32 %v245_v32, %v1527_v62 }
  0xa5   :  { %v395_v52 = vmax.f32 %v272_v41, 0.0 }
  0xa6   :  { %v408_v36 = vmax.f32 %v232_v31, 0.0  ;;  %v409_v38 = vmax.f32 %v246_v34, 0.0 }
  0xa8   :  { %v428_v39 = vpack.c.bf16 %v408_v36, %v392_v35  ;;  %v429_v42 = vpack.c.bf16 %v409_v38, %v393_v37  ;;  %v259_v44 = vpop.f32.mrf.mxu2 }
  0xa9   :  { %v260_v46 = vadd.f32 %v259_v44, %v1527_v62 }
  0xaa   :  { %v273_v45 = vpop.f32.mrf.mxu3  ;;  %563 = vmatpush.bf16.msrb.mxu0 %v428_v39  ;;  %582 = vmatpush.bf16.msrb.mxu1 %v429_v42 }
  0xab   :  { %v274_v47 = vadd.f32 %v273_v45, %v1527_v62  ;;  %v285_v48 = vpop.f32.mrf.mxu0  ;;  %v299_v49 = vpop.f32.mrf.mxu1  ;;  %v410_v53 = vmax.f32 %v260_v46, 0.0 }
  0xac   :  { %v286_v58 = vadd.f32 %v285_v48, %v1521_v55  ;;  %v300_v61 = vadd.f32 %v299_v49, %v1521_v55 }
  0xad   :  { %v411_v54 = vmax.f32 %v274_v47, 0.0  ;;  %1279 = vmatmul.msk.bf16.gmra.mxu0 %vm160_vm0, %v1564_v43  ;;  %1281 = vmatmul.msk.bf16.gmra.mxu1 %vm160_vm0, %v1564_v43  ;;  %v430_v56 = vpack.c.bf16 %v410_v53, %v394_v51  ;;  %v1648_v53 = vpop.permute.xlu2 %456 }
  0xae   :  { %v396_v4 = vmax.f32 %v286_v58, 0.0  ;;  %v397_v6 = vmax.f32 %v300_v61, 0.0 }
  0xaf   :  { %v431_v57 = vpack.c.bf16 %v411_v54, %v395_v52  ;;  %601 = vmatpush.bf16.msrb.mxu2 %v430_v56  ;;  %v1646_v52 = vpop.permute.xlu1 %446 }
  0xb0   :  { %v313_v59 = vpop.f32.mrf.mxu2 }
  0xb1   :  { %620 = vmatpush.bf16.msrb.mxu3 %v431_v57  ;;  %v314_v9 = vadd.f32 %v313_v59, %v1521_v55 }
  0xb2   :  { %v327_v60 = vpop.f32.mrf.mxu3  ;;  %1283 = vmatmul.msk.bf16.gmra.mxu2 %vm160_vm0, %v1564_v43 }
  0xb3   :  { %v287_v63 = vpop.f32.mrf.mxu0  ;;  %v301_v1 = vpop.f32.mrf.mxu1  ;;  %v328_v10 = vadd.f32 %v327_v60, %v1521_v55  ;;  %v398_v19 = vmax.f32 %v314_v9, 0.0 }
  0xb4   :  { %v288_v0 = vadd.f32 %v287_v63, %v1527_v62  ;;  %1285 = vmatmul.msk.bf16.gmra.mxu3 %vm160_vm0, %v1564_v43  ;;  %v302_v3 = vadd.f32 %v301_v1, %v1527_v62  ;;  %v1655_v1 = vpop.permute.xlu0 %854 }
  0xb5   :  { %v399_v20 = vmax.f32 %v328_v10, 0.0  ;;  %v1652_v61 = vpop.permute.xlu2 %461 }
  0xb6   :  { %v412_v5 = vmax.f32 %v288_v0, 0.0  ;;  %v413_v7 = vmax.f32 %v302_v3, 0.0 }
  0xb7   :  { %v1650_v59 = vpop.permute.xlu1 %451 }
  0xb8   :  { %v432_v8 = vpack.c.bf16 %v412_v5, %v396_v4  ;;  %v433_v11 = vpack.c.bf16 %v413_v7, %v397_v6  ;;  %v315_v12 = vpop.f32.mrf.mxu2 }
  0xb9   :  { %v316_v15 = vadd.f32 %v315_v12, %v1527_v62 }
  0xba   :  { %v329_v14 = vpop.f32.mrf.mxu3  ;;  %639 = vmatpush.bf16.msra.mxu0 %v432_v8  ;;  %658 = vmatpush.bf16.msra.mxu1 %v433_v11 }
  0xbb   :  { %v330_v16 = vadd.f32 %v329_v14, %v1527_v62  ;;  %v341_v17 = vpop.f32.mrf.mxu0  ;;  %v355_v18 = vpop.f32.mrf.mxu1  ;;  %v414_v21 = vmax.f32 %v316_v15, 0.0 }
  0xbc   :  { %v342_v25 = vadd.f32 %v341_v17, %v1521_v55  ;;  %v356_v28 = vadd.f32 %v355_v18, %v1521_v55 }
  0xbd   :  { %v415_v22 = vmax.f32 %v330_v16, 0.0  ;;  %1286 = vmatmul.msk.bf16.vlgmr.msrb.gmra.mxu0 %vm160_vm0, %v1540_v13  ;;  %1288 = vmatmul.msk.bf16.vlgmr.msrb.gmra.mxu1 %vm160_vm0, %v1540_v13  ;;  %v434_v23 = vpack.c.bf16 %v414_v21, %v398_v19 }
  0xbe   :  { %v400_v33 = vmax.f32 %v342_v25, 0.0  ;;  %v401_v35 = vmax.f32 %v356_v28, 0.0  ;;  %v1674_v28 = vpop.permute.xlu0 %869 }
  0xbf   :  { %v435_v24 = vpack.c.bf16 %v415_v22, %v399_v20  ;;  %677 = vmatpush.bf16.msra.mxu2 %v434_v23  ;;  %v1660_v8 = vpop.permute.xlu1 %859 }
  0xc0   :  { %v369_v26 = vpop.f32.mrf.mxu2 }
  0xc1   :  { %696 = vmatpush.bf16.msra.mxu3 %v435_v24  ;;  %v370_v38 = vadd.f32 %v369_v26, %v1521_v55 }
  0xc2   :  { %v383_v27 = vpop.f32.mrf.mxu3  ;;  %1290 = vmatmul.msk.bf16.vlgmr.msrb.gmra.mxu2 %vm160_vm0, %v1540_v13 }
  0xc3   :  { %v343_v29 = vpop.f32.mrf.mxu0  ;;  %v357_v31 = vpop.f32.mrf.mxu1  ;;  %v384_v39 = vadd.f32 %v383_v27, %v1521_v55  ;;  %v402_v46 = vmax.f32 %v370_v38, 0.0 }
  0xc4   :  { %v344_v30 = vadd.f32 %v343_v29, %v1527_v62  ;;  %1292 = vmatmul.msk.bf16.vlgmr.msrb.gmra.mxu3 %vm160_vm0, %v1540_v13  ;;  %v358_v32 = vadd.f32 %v357_v31, %v1527_v62 }
  0xc5   :  { %v403_v47 = vmax.f32 %v384_v39, 0.0 }
  0xc6   :  { %v416_v34 = vmax.f32 %v344_v30, 0.0  ;;  %v417_v36 = vmax.f32 %v358_v32, 0.0 }
  0xc8   :  { %v436_v37 = vpack.c.bf16 %v416_v34, %v400_v33  ;;  %v437_v40 = vpack.c.bf16 %v417_v36, %v401_v35  ;;  %v371_v41 = vpop.f32.mrf.mxu2 }
  0xc9   :  { %v372_v44 = vadd.f32 %v371_v41, %v1527_v62 }
  0xca   :  { %v385_v42 = vpop.f32.mrf.mxu3  ;;  %715 = vmatpush.bf16.msrb.mxu0 %v436_v37  ;;  %734 = vmatpush.bf16.msrb.mxu1 %v437_v40 }
  0xcb   :  { %v386_v45 = vadd.f32 %v385_v42, %v1527_v62  ;;  %v418_v48 = vmax.f32 %v372_v44, 0.0 }
  0xcd   :  { %v419_v49 = vmax.f32 %v386_v45, 0.0  ;;  %1287 = vmatmul.msk.bf16.gmra.mxu0 %vm160_vm0, %v1564_v43  ;;  %1289 = vmatmul.msk.bf16.gmra.mxu1 %vm160_vm0, %v1564_v43  ;;  %v438_v55 = vpack.c.bf16 %v418_v48, %v402_v46 }
  0xcf   :  { %v439_v50 = vpack.c.bf16 %v419_v49, %v403_v47  ;;  %753 = vmatpush.bf16.msrb.mxu2 %v438_v55 }
  0xd1   :  { %772 = vmatpush.bf16.msrb.mxu3 %v439_v50 }
  0xd2   :  { %1291 = vmatmul.msk.bf16.gmra.mxu2 %vm160_vm0, %v1564_v43 }
  0xd4   :  { %1293 = vmatmul.msk.bf16.gmra.mxu3 %vm160_vm0, %v1564_v43 }
  0xdd   :  { %1294 = vmatmul.msk.bf16.vlgmr.msra.gmra.mxu0 %vm160_vm0, %v1540_v13  ;;  %1296 = vmatmul.msk.bf16.vlgmr.msra.gmra.mxu1 %vm160_vm0, %v1540_v13 }
  0xe2   :  { %1298 = vmatmul.msk.bf16.vlgmr.msra.gmra.mxu2 %vm160_vm0, %v1540_v13 }
  0xe4   :  { %1300 = vmatmul.msk.bf16.vlgmr.msra.gmra.mxu3 %vm160_vm0, %v1540_v13 }
  0xed   :  { %1295 = vmatmul.msk.bf16.gmra.mxu0 %vm160_vm0, %v1564_v43  ;;  %1297 = vmatmul.msk.bf16.gmra.mxu1 %vm160_vm0, %v1564_v43 }
  0xef   :  { %v1663_v12 = vpop.permute.xlu2 %864 }
  0xf2   :  { %1299 = vmatmul.msk.bf16.gmra.mxu2 %vm160_vm0, %v1564_v43 }
  0xf4   :  { %1301 = vmatmul.msk.bf16.gmra.mxu3 %vm160_vm0, %v1564_v43 }
  0xfd   :  { %1302 = vmatmul.msk.bf16.vlgmr.msrb.gmra.mxu0 %vm160_vm0, %v1540_v13  ;;  %1304 = vmatmul.msk.bf16.vlgmr.msrb.gmra.mxu1 %vm160_vm0, %v1540_v13 }
 0x102   :  { %1306 = vmatmul.msk.bf16.vlgmr.msrb.gmra.mxu2 %vm160_vm0, %v1540_v13 }
 0x104   :  { %1308 = vmatmul.msk.bf16.vlgmr.msrb.gmra.mxu3 %vm160_vm0, %v1540_v13 }
 0x10d   :  { %1303 = vmatmul.msk.bf16.gmra.mxu0 %vm160_vm0, %v1564_v43  ;;  %1305 = vmatmul.msk.bf16.gmra.mxu1 %vm160_vm0, %v1564_v43 }
 0x112   :  { %1307 = vmatmul.msk.bf16.gmra.mxu2 %vm160_vm0, %v1564_v43 }
 0x114   :  { %1309 = vmatmul.msk.bf16.gmra.mxu3 %vm160_vm0, %v1564_v43 }
 0x11a   :  { %v489_v62 = vpop.f32.mrf.mxu0  ;;  %v508_v51 = vpop.f32.mrf.mxu1 }
 0x11b   :  { %v509_v2 = vadd.f32 %v508_v51, %v1646_v52  ;;  %v490_v17 = vadd.f32 %v489_v62, %v1646_v52 }
 0x11d   :  { %v785_v9 = vmax.f32 %v509_v2, 0.0  ;;  %v784_v31 = vmax.f32 %v490_v17, 0.0 }
 0x11f   :  { %v873_v23 = vmul.f32 %v1655_v1, %v785_v9  ;;  %v872_v47 = vmul.f32 %v1655_v1, %v784_v31 }
 0x122   :  { %v491_v54 = vpop.f32.mrf.mxu0  ;;  %v510_v13 = vpop.f32.mrf.mxu1 }
 0x123   :  { %v511_v43 = vadd.f32 %v510_v13, %v1650_v59  ;;  %v492_v10 = vadd.f32 %v491_v54, %v1650_v59 }
 0x125   :  { %v527_v56 = vpop.f32.mrf.mxu2  ;;  %v801_v6 = vmax.f32 %v511_v43, 0.0  ;;  %v800_v24 = vmax.f32 %v492_v10, 0.0 }
 0x126   :  { %v528_v21 = vadd.f32 %v527_v56, %v1646_v52 }
 0x127   :  { %v546_v57 = vpop.f32.mrf.mxu3  ;;  %v889_v20 = vmul.f32 %v1660_v8, %v801_v6  ;;  %v888_v39 = vmul.f32 %v1660_v8, %v800_v24 }
 0x128   :  { %v786_v35 = vmax.f32 %v528_v21, 0.0  ;;  %v547_v41 = vadd.f32 %v546_v57, %v1646_v52 }
 0x129   :  { %v945_v34 = vadd.f32 %v889_v20, %v873_v23  ;;  %v936_v56 = vadd.f32 %v888_v39, %v872_v47 }
 0x12a   :  { %v494_v58 = vpop.f32.mrf.mxu0  ;;  %v513_v60 = vpop.f32.mrf.mxu1  ;;  %v874_v50 = vmul.f32 %v1655_v1, %v786_v35 }
 0x12b   :  { %v514_v3 = vadd.f32 %v513_v60, %v1648_v53  ;;  %v495_v18 = vadd.f32 %v494_v58, %v1648_v53  ;;  %v787_v60 = vmax.f32 %v547_v41, 0.0 }
 0x12d   :  { %v529_v63 = vpop.f32.mrf.mxu2  ;;  %v817_v11 = vmax.f32 %v514_v3, 0.0  ;;  %v816_v32 = vmax.f32 %v495_v18, 0.0  ;;  %v875_v10 = vmul.f32 %v1655_v1, %v787_v60 }
 0x12e   :  { %v530_v14 = vadd.f32 %v529_v63, %v1650_v59 }
 0x12f   :  { %v548_v0 = vpop.f32.mrf.mxu3  ;;  %v905_v26 = vmul.f32 %v1663_v12, %v817_v11  ;;  %v904_v48 = vmul.f32 %v1663_v12, %v816_v32 }
 0x130   :  { %v802_v29 = vmax.f32 %v530_v14, 0.0  ;;  %v549_v36 = vadd.f32 %v548_v0, %v1650_v59 }
 0x131   :  { %v946_v40 = vadd.f32 %v945_v34, %v905_v26  ;;  %v937_v2 = vadd.f32 %v936_v56, %v904_v48 }
 0x132   :  { %v496_v4 = vpop.f32.mrf.mxu0  ;;  %v515_v5 = vpop.f32.mrf.mxu1  ;;  %v890_v42 = vmul.f32 %v1660_v8, %v802_v29  ;;  %v803_v62 = vmax.f32 %v549_v36, 0.0 }
 0x133   :  { %v516_v7 = vadd.f32 %v515_v5, %v1652_v61  ;;  %v497_v25 = vadd.f32 %v496_v4, %v1652_v61 }
 0x134   :  { %v954_v63 = vadd.f32 %v890_v42, %v874_v50  ;;  %v891_v5 = vmul.f32 %v1660_v8, %v803_v62 }
 0x135   :  { %v532_v15 = vpop.f32.mrf.mxu2  ;;  %v833_v19 = vmax.f32 %v516_v7, 0.0  ;;  %v832_v38 = vmax.f32 %v497_v25, 0.0 }
 0x136   :  { %v533_v22 = vadd.f32 %v532_v15, %v1648_v53  ;;  %v963_v18 = vadd.f32 %v891_v5, %v875_v10 }
 0x137   :  { %v551_v16 = vpop.f32.mrf.mxu3  ;;  %v921_v33 = vmul.f32 %v1674_v28, %v833_v19  ;;  %v920_v13 = vmul.f32 %v1674_v28, %v832_v38 }
 0x138   :  { %v818_v37 = vmax.f32 %v533_v22, 0.0  ;;  %v552_v44 = vadd.f32 %v551_v16, %v1648_v53 }
 0x139   :  { %v947_v49 = vadd.f32 %v946_v40, %v921_v33  ;;  %v938_v9 = vadd.f32 %v937_v2, %v920_v13 }
 0x13a   :  { %v565_v27 = vpop.f32.mrf.mxu0  ;;  %v584_v30 = vpop.f32.mrf.mxu1  ;;  %v906_v51 = vmul.f32 %v1663_v12, %v818_v37  ;;  %v819_v0 = vmax.f32 %v552_v44, 0.0 }
 0x13b   :  { %v948_v3 = vrot.slane %v947_v49, 4  ;;  %v939_v21 = vrot.slane %v938_v9, 4  ;;  %v566_v25 = vadd.f32 %v565_v27, %v1646_v52  ;;  %v585_v33 = vadd.f32 %v584_v30, %v1646_v52 }
 0x13c   :  { %v955_v6 = vadd.f32 %v954_v63, %v906_v51  ;;  %v907_v11 = vmul.f32 %v1663_v12, %v819_v0  ;;  %v1704_v30 = vstv %s1843_s6  ;;  %s1425_s6 = smov [#allocation6]  }
 0x13d   :  { %v534_v45 = vpop.f32.mrf.mxu2  ;;  %v949_v17 = vadd.f32 %v948_v3, %v947_v49  ;;  %v940_v37 = vadd.f32 %v939_v21, %v938_v9  ;;  %v788_v39 = vmax.f32 %v566_v25, 0.0  ;;  %v789_v27 = vmax.f32 %v585_v33, 0.0  ;;  %s1174_s30 = sshll.u32 %s1425_s6, 4  ;;  %s1175_s30 = int_to_ptr.vmem [resolvable:$true] %s1174_s30 }
 0x13e   :  { %v535_v55 = vadd.f32 %v534_v45, %v1652_v61  ;;  %v964_v24 = vadd.f32 %v963_v18, %v907_v11 }
 0x13f   :  { %v553_v46 = vpop.f32.mrf.mxu3  ;;  %v950_v32 = vrot.slane %v949_v17, 2  ;;  %v941_v49 = vrot.slane %v940_v37, 2  ;;  %v876_v62 = vmul.f32 %v1655_v1, %v788_v39 }
 0x140   :  { %v554_v54 = vadd.f32 %v553_v46, %v1652_v61  ;;  %v834_v57 = vmax.f32 %v535_v55, 0.0 }
 0x141   :  { %v951_v45 = vadd.f32 %v950_v32, %v949_v17 }
 0x142   :  { %v567_v58 = vpop.f32.mrf.mxu0  ;;  %v586_v43 = vpop.f32.mrf.mxu1  ;;  %v922_v4 = vmul.f32 %v1674_v28, %v834_v57  ;;  %v835_v7 = vmax.f32 %v554_v54, 0.0 }
 0x143   :  { %v568_v20 = vadd.f32 %v567_v58, %v1650_v59  ;;  %v587_v22 = vadd.f32 %v586_v43, %v1650_v59  ;;  %v952_v57 = vrot.slane %v951_v45, 1  ;;  %v877_v58 = vmul.f32 %v1655_v1, %v789_v27 }
 0x144   :  { %v956_v14 = vadd.f32 %v955_v6, %v922_v4  ;;  %v923_v19 = vmul.f32 %v1674_v28, %v835_v7 }
 0x145   :  { %v603_v15 = vpop.f32.mrf.mxu2  ;;  %v804_v36 = vmax.f32 %v568_v20, 0.0  ;;  %v805_v38 = vmax.f32 %v587_v22, 0.0 }
 0x146   :  { %v957_v26 = vrot.slane %v956_v14, 4  ;;  %v965_v35 = vadd.f32 %v964_v24, %v923_v19  ;;  %v604_v5 = vadd.f32 %v603_v15, %v1646_v52 }
 0x147   :  { %v622_v16 = vpop.f32.mrf.mxu3  ;;  %v892_v48 = vmul.f32 %v1660_v8, %v804_v36  ;;  %v893_v55 = vmul.f32 %v1660_v8, %v805_v38 }
 0x148   :  { %v958_v40 = vadd.f32 %v957_v26, %v956_v14  ;;  %v966_v47 = vrot.slane %v965_v35, 4  ;;  %v623_v10 = vadd.f32 %v622_v16, %v1646_v52  ;;  %v953_v26 = vadd.f32 %v952_v57, %v951_v45 }
 0x149   :  { %v972_v43 = vadd.f32 %v892_v48, %v876_v62  ;;  %v981_v4 = vadd.f32 %v893_v55, %v877_v58 }
 0x14a   :  { %v570_v23 = vpop.f32.mrf.mxu0  ;;  %v589_v31 = vpop.f32.mrf.mxu1  ;;  %v959_v51 = vrot.slane %v958_v40, 2  ;;  %v967_v0 = vadd.f32 %v966_v47, %v965_v35  ;;  %v1083_v27 = vadd.f32 %v1704_v30, %v953_v26 }
 0x14b   :  { %v571_v29 = vadd.f32 %v570_v23, %v1648_v53  ;;  %v590_v34 = vadd.f32 %v589_v31, %v1648_v53  ;;  %v942_v23 = vadd.f32 %v941_v49, %v940_v37 }
 0x14c   :  { %v960_v9 = vadd.f32 %v959_v51, %v958_v40  ;;  %v968_v15 = vrot.slane %v967_v0, 2  ;;  %1337 = vtanh.f32 %v1083_v27 }
 0x14d   :  { %v820_v41 = vmax.f32 %v571_v29, 0.0  ;;  %v605_v42 = vpop.f32.mrf.mxu2  ;;  %v821_v46 = vmax.f32 %v590_v34, 0.0  ;;  %v790_v29 = vmax.f32 %v604_v5, 0.0  ;;  %v791_v34 = vmax.f32 %v623_v10, 0.0 }
 0x14e   :  { %v606_v2 = vadd.f32 %v605_v42, %v1650_v59  ;;  %v961_v33 = vrot.slane %v960_v9, 1  ;;  %v969_v42 = vadd.f32 %v968_v15, %v967_v0 }
 0x14f   :  { %v624_v44 = vpop.f32.mrf.mxu3  ;;  %v908_v54 = vmul.f32 %v1663_v12, %v820_v41  ;;  %v909_v60 = vmul.f32 %v1663_v12, %v821_v46  ;;  %v943_v41 = vrot.slane %v942_v23, 1  ;;  %v878_v45 = vmul.f32 %v1655_v1, %v790_v29 }
 0x150   :  { %v625_v6 = vadd.f32 %v624_v44, %v1650_v59  ;;  %v806_v24 = vmax.f32 %v606_v2, 0.0  ;;  %v962_v48 = vadd.f32 %v961_v33, %v960_v9  ;;  %v879_v49 = vmul.f32 %v1655_v1, %v791_v34 }
 0x151   :  { %v973_v11 = vadd.f32 %v972_v43, %v908_v54  ;;  %v982_v19 = vadd.f32 %v981_v4, %v909_v60  ;;  %v944_v58 = vadd.f32 %v943_v41, %v942_v23  ;;  %v970_v60 = vrot.slane %v969_v42, 1 }
 0x152   :  { %v572_v50 = vpop.f32.mrf.mxu0  ;;  %v591_v56 = vpop.f32.mrf.mxu1  ;;  %v807_v31 = vmax.f32 %v625_v6, 0.0  ;;  %v894_v44 = vmul.f32 %v1660_v8, %v806_v24  ;;  %v1084_v6 = vadd.f32 %v1704_v30, %v962_v48 }
 0x153   :  { %v573_v13 = vadd.f32 %v572_v50, %v1652_v61  ;;  %v592_v63 = vadd.f32 %v591_v56, %v1652_v61  ;;  %v1338_v29 = vpop.eup %1337 }
 0x154   :  { %v895_v46 = vmul.f32 %v1660_v8, %v807_v31  ;;  %1339 = vtanh.f32 %v1084_v6 }
 0x155   :  { %v836_v3 = vmax.f32 %v573_v13, 0.0  ;;  %v837_v7 = vmax.f32 %v592_v63, 0.0  ;;  %v608_v17 = vpop.f32.mrf.mxu2  ;;  %v990_v63 = vadd.f32 %v894_v44, %v878_v45 }
 0x156   :  { %v609_v21 = vadd.f32 %v608_v17, %v1648_v53  ;;  %v999_v43 = vadd.f32 %v895_v46, %v879_v49  ;;  %v1082_v17 = vadd.f32 %v1704_v30, %v944_v58 }
 0x157   :  { %v924_v14 = vmul.f32 %v1674_v28, %v836_v3  ;;  %v627_v18 = vpop.f32.mrf.mxu3  ;;  %v925_v20 = vmul.f32 %v1674_v28, %v837_v7 }
 0x158   :  { %v628_v22 = vadd.f32 %v627_v18, %v1648_v53  ;;  %v822_v36 = vmax.f32 %v609_v21, 0.0  ;;  %v971_v18 = vadd.f32 %v970_v60, %v969_v42  ;;  %1341 = vtanh.f32 %v1082_v17 }
 0x159   :  { %v974_v25 = vadd.f32 %v973_v11, %v924_v14  ;;  %v983_v16 = vadd.f32 %v982_v19, %v925_v20 }
 0x15a   :  { %v641_v32 = vpop.f32.mrf.mxu0  ;;  %v660_v38 = vpop.f32.mrf.mxu1  ;;  %v823_v40 = vmax.f32 %v628_v22, 0.0  ;;  %v910_v50 = vmul.f32 %v1663_v12, %v822_v36  ;;  %v1085_v31 = vadd.f32 %v1704_v30, %v971_v18 }
 0x15b   :  { %v975_v35 = vrot.slane %v974_v25, 4  ;;  %v984_v39 = vrot.slane %v983_v16, 4  ;;  %v642_v33 = vadd.f32 %v641_v32, %v1646_v52  ;;  %v661_v41 = vadd.f32 %v660_v38, %v1646_v52  ;;  %v1744_v49 = vpop.eup %1339 }
 0x15c   :  { %v911_v13 = vmul.f32 %v1663_v12, %v823_v40  ;;  %v991_v9 = vadd.f32 %v990_v63, %v910_v50  ;;  %1343 = vtanh.f32 %v1085_v31 }
 0x15d   :  { %v976_v37 = vadd.f32 %v975_v35, %v974_v25  ;;  %v985_v47 = vadd.f32 %v984_v39, %v983_v16  ;;  %v610_v62 = vpop.f32.mrf.mxu2  ;;  %v792_v48 = vmax.f32 %v642_v33, 0.0 }
 0x15e   :  { %v611_v56 = vadd.f32 %v610_v62, %v1652_v61  ;;  %v1000_v10 = vadd.f32 %v999_v43, %v911_v13  ;;  %v1131_v43 = vrot.slane %v1744_v49, 6 }
 0x15f   :  { %v977_v55 = vrot.slane %v976_v37, 2  ;;  %v629_v51 = vpop.f32.mrf.mxu3  ;;  %v986_v54 = vrot.slane %v985_v47, 2 }
 0x160   :  { %v630_v57 = vadd.f32 %v629_v51, %v1652_v61  ;;  %v838_v3 = vmax.f32 %v611_v56, 0.0  ;;  %v1342_v51 = vpop.eup %1341 }
 0x161   :  { %v978_v0 = vadd.f32 %v977_v55, %v976_v37  ;;  %v987_v2 = vadd.f32 %v986_v54, %v985_v47  ;;  %v1130_v47 = vrot.slane %v1338_v29, 7  ;;  %v793_v54 = vmax.f32 %v661_v41, 0.0 }
 0x162   :  { %v839_v4 = vmax.f32 %v630_v57, 0.0  ;;  %v643_v5 = vpop.f32.mrf.mxu0  ;;  %v662_v7 = vpop.f32.mrf.mxu1  ;;  %v926_v11 = vmul.f32 %v1674_v28, %v838_v3 }
 0x163   :  { %v979_v19 = vrot.slane %v978_v0, 1  ;;  %v988_v20 = vrot.slane %v987_v2, 1  ;;  %v644_v23 = vadd.f32 %v643_v5, %v1650_v59  ;;  %v663_v39 = vadd.f32 %v662_v7, %v1650_v59 }
 0x164   :  { %v927_v14 = vmul.f32 %v1674_v28, %v839_v4  ;;  %v992_v21 = vadd.f32 %v991_v9, %v926_v11  ;;  %v1751_v3 = vsel %vm1144_vm1, %v1342_v51, %v1130_v47  ;;  %v1344_v9 = vpop.eup %1343 }
 0x165   :  { %v679_v15 = vpop.f32.mrf.mxu2  ;;  %v980_v16 = vadd.f32 %v979_v19, %v978_v0  ;;  %v989_v34 = vadd.f32 %v988_v20, %v987_v2  ;;  %v808_v42 = vmax.f32 %v644_v23, 0.0  ;;  %v809_v62 = vmax.f32 %v663_v39, 0.0 }
 0x166   :  { %v1001_v22 = vadd.f32 %v1000_v10, %v927_v14  ;;  %v993_v25 = vrot.slane %v992_v21, 4  ;;  %v880_v2 = vmul.f32 %v1655_v1, %v792_v48  ;;  %v881_v10 = vmul.f32 %v1655_v1, %v793_v54 }
 0x167   :  { %v1735_v24 = vpop.f32.mrf.mxu3  ;;  %v1086_v32 = vadd.f32 %v1704_v30, %v980_v16  ;;  %v1087_v55 = vadd.f32 %v1704_v30, %v989_v34  ;;  %v896_v13 = vmul.f32 %v1660_v8, %v808_v42  ;;  %v897_v6 = vmul.f32 %v1660_v8, %v809_v62 }
 0x168   :  { %v1002_v26 = vrot.slane %v1001_v22, 4  ;;  %v994_v35 = vadd.f32 %v993_v25, %v992_v21  ;;  %v680_v23 = vadd.f32 %v679_v15, %v1646_v52  ;;  %v699_v16 = vadd.f32 %v1735_v24, %v1646_v52 }
 0x169   :  { %1345 = vtanh.f32 %v1086_v32  ;;  %v1008_v11 = vadd.f32 %v896_v13, %v880_v2  ;;  %v1017_v31 = vadd.f32 %v897_v6, %v881_v10 }
 0x16a   :  { %v1003_v36 = vadd.f32 %v1002_v26, %v1001_v22  ;;  %v646_v40 = vpop.f32.mrf.mxu0  ;;  %v665_v37 = vpop.f32.mrf.mxu1  ;;  %v995_v27 = vrot.slane %v994_v35, 2  ;;  %1347 = vtanh.f32 %v1087_v55  ;;  %v794_v32 = vmax.f32 %v680_v23, 0.0 }
 0x16b   :  { %v647_v44 = vadd.f32 %v646_v40, %v1648_v53  ;;  %v666_v46 = vadd.f32 %v665_v37, %v1648_v53  ;;  %v795_v48 = vmax.f32 %v699_v16, 0.0 }
 0x16c   :  { %v1004_v45 = vrot.slane %v1003_v36, 2  ;;  %v996_v50 = vadd.f32 %v995_v27, %v994_v35  ;;  %v1132_v35 = vrot.slane %v1344_v9, 5 }
 0x16d   :  { %v824_v56 = vmax.f32 %v647_v44, 0.0  ;;  %v681_v57 = vpop.f32.mrf.mxu2  ;;  %v825_v0 = vmax.f32 %v666_v46, 0.0  ;;  %v883_v6 = vmul.f32 %v1655_v1, %v795_v48 }
 0x16e   :  { %v1005_v38 = vadd.f32 %v1004_v45, %v1003_v36  ;;  %v997_v60 = vrot.slane %v996_v50, 1  ;;  %v682_v25 = vadd.f32 %v681_v57, %v1650_v59  ;;  %v1147_v57 = vsel %vm1146_vm2, %v1131_v43, %v1132_v35 }
 0x16f   :  { %v700_v58 = vpop.f32.mrf.mxu3  ;;  %v912_v14 = vmul.f32 %v1663_v12, %v824_v56  ;;  %v913_v21 = vmul.f32 %v1663_v12, %v825_v0  ;;  %v1346_v34 = vpop.eup %1345 }
 0x170   :  { %v1006_v63 = vrot.slane %v1005_v38, 1  ;;  %v998_v4 = vadd.f32 %v997_v60, %v996_v50  ;;  %v701_v26 = vadd.f32 %v700_v58, %v1650_v59  ;;  %v1348_v41 = vpop.eup %1347  ;;  %v810_v45 = vmax.f32 %v682_v25, 0.0 }
 0x171   :  { %v1009_v36 = vadd.f32 %v1008_v11, %v912_v14  ;;  %v1018_v42 = vadd.f32 %v1017_v31, %v913_v21  ;;  %v1133_v47 = vrot.slane %v1346_v34, 4  ;;  %v1134_v50 = vrot.slane %v1348_v41, 3 }
 0x172   :  { %v1007_v5 = vadd.f32 %v1006_v63, %v1005_v38  ;;  %v648_v7 = vpop.f32.mrf.mxu0  ;;  %v667_v18 = vpop.f32.mrf.mxu1  ;;  %v1088_v19 = vadd.f32 %v1704_v30, %v998_v4  ;;  %v811_v24 = vmax.f32 %v701_v26, 0.0  ;;  %v898_v63 = vmul.f32 %v1660_v8, %v810_v45 }
 0x173   :  { %v649_v17 = vadd.f32 %v648_v7, %v1652_v61  ;;  %v668_v22 = vadd.f32 %v667_v18, %v1652_v61  ;;  %v1149_v25 = vsel %vm1148_vm4, %v1751_v3, %v1147_v57 }
 0x174   :  { %v1089_v20 = vadd.f32 %v1704_v30, %v1007_v5  ;;  %1349 = vtanh.f32 %v1088_v19  ;;  %v899_v0 = vmul.f32 %v1660_v8, %v811_v24  ;;  %v882_v5 = vmul.f32 %v1655_v1, %v794_v32 }
 0x175   :  { %v840_v29 = vmax.f32 %v649_v17, 0.0  ;;  %v841_v33 = vmax.f32 %v668_v22, 0.0  ;;  %v684_v40 = vpop.f32.mrf.mxu2  ;;  %v1151_v17 = vsel %vm1150_vm3, %v1133_v47, %v1134_v50 }
 0x176   :  { %1351 = vtanh.f32 %v1089_v20  ;;  %v685_v37 = vadd.f32 %v684_v40, %v1648_v53  ;;  %v1026_v22 = vadd.f32 %v898_v63, %v882_v5  ;;  %v1035_v23 = vadd.f32 %v899_v0, %v883_v6 }
 0x177   :  { %v928_v39 = vmul.f32 %v1674_v28, %v840_v29  ;;  %v703_v15 = vpop.f32.mrf.mxu3  ;;  %v929_v44 = vmul.f32 %v1674_v28, %v841_v33 }
 0x178   :  { %v704_v27 = vadd.f32 %v703_v15, %v1648_v53  ;;  %v826_v62 = vmax.f32 %v685_v37, 0.0 }
 0x179   :  { %v1010_v46 = vadd.f32 %v1009_v36, %v928_v39  ;;  %v1019_v49 = vadd.f32 %v1018_v42, %v929_v44 }
 0x17a   :  { %v717_v55 = vpop.f32.mrf.mxu0  ;;  %v827_v51 = vmax.f32 %v704_v27, 0.0  ;;  %v736_v54 = vpop.f32.mrf.mxu1  ;;  %v914_v10 = vmul.f32 %v1663_v12, %v826_v62 }
 0x17b   :  { %v1011_v38 = vrot.slane %v1010_v46, 4  ;;  %v1350_v13 = vpop.eup %1349  ;;  %v1020_v56 = vrot.slane %v1019_v49, 4  ;;  %v718_v32 = vadd.f32 %v717_v55, %v1646_v52  ;;  %v737_v48 = vadd.f32 %v736_v54, %v1646_v52 }
 0x17c   :  { %v1352_v58 = vpop.eup %1351  ;;  %v1135_v60 = vrot.slane %v1350_v13, 2  ;;  %v915_v43 = vmul.f32 %v1663_v12, %v827_v51  ;;  %v1027_v39 = vadd.f32 %v1026_v22, %v914_v10 }
 0x17d   :  { %v1012_v2 = vadd.f32 %v1011_v38, %v1010_v46  ;;  %v1136_v4 = vrot.slane %v1352_v58, 1  ;;  %v1021_v7 = vadd.f32 %v1020_v56, %v1019_v49  ;;  %v686_v11 = vpop.f32.mrf.mxu2 }
 0x17e   :  { %v687_v19 = vadd.f32 %v686_v11, %v1652_v61  ;;  %v1036_v40 = vadd.f32 %v1035_v23, %v915_v43 }
 0x17f   :  { %v1013_v9 = vrot.slane %v1012_v2, 2  ;;  %v705_v14 = vpop.f32.mrf.mxu3  ;;  %v1022_v18 = vrot.slane %v1021_v7, 2  ;;  %v1153_v21 = vsel %vm1152_vm5, %v1135_v60, %v1136_v4  ;;  %v797_v4 = vmax.f32 %v737_v48, 0.0 }
 0x180   :  { %v706_v20 = vadd.f32 %v705_v14, %v1652_v61  ;;  %v1155_v26 = vsel %vm1154_vm6, %v1151_v17, %v1153_v21  ;;  %v842_v31 = vmax.f32 %v687_v19, 0.0 }
 0x181   :  { %v1023_v29 = vadd.f32 %v1022_v18, %v1021_v7  ;;  %v1157_v34 = vsel %vm1156_vm7, %v1149_v25, %v1155_v26  ;;  %v1014_v35 = vadd.f32 %v1013_v9, %v1012_v2  ;;  %v796_v2 = vmax.f32 %v718_v32, 0.0 }
 0x182   :  { %v843_v16 = vmax.f32 %v706_v20, 0.0  ;;  %v719_v33 = vpop.f32.mrf.mxu0  ;;  %v738_v36 = vpop.f32.mrf.mxu1  ;;  %1167 = vst [vmem:[#allocation6] sm:$0xff] %v1157_v34  ;;  %v930_v15 = vmul.f32 %v1674_v28, %v842_v31  ;;  %v885_v20 = vmul.f32 %v1655_v1, %v797_v4 }
 0x183   :  { %v1024_v42 = vrot.slane %v1023_v29, 1  ;;  %v1015_v37 = vrot.slane %v1014_v35, 1  ;;  %v720_v27 = vadd.f32 %v719_v33, %v1650_v59  ;;  %v739_v62 = vadd.f32 %v738_v36, %v1650_v59 }
 0x184   :  { %v931_v41 = vmul.f32 %v1674_v28, %v843_v16  ;;  %v1028_v44 = vadd.f32 %v1027_v39, %v930_v15  ;;  %v884_v19 = vmul.f32 %v1655_v1, %v796_v2 }
 0x185   :  { %v755_v45 = vpop.f32.mrf.mxu2  ;;  %v1025_v49 = vadd.f32 %v1024_v42, %v1023_v29  ;;  %v1016_v13 = vadd.f32 %v1015_v37, %v1014_v35  ;;  %v812_v56 = vmax.f32 %v720_v27, 0.0  ;;  %v813_v6 = vmax.f32 %v739_v62, 0.0 }
 0x186   :  { %v1037_v3 = vadd.f32 %v1036_v40, %v931_v41  ;;  %v1029_v46 = vrot.slane %v1028_v44, 4  ;;  %v756_v39 = vadd.f32 %v755_v45, %v1646_v52 }
 0x187   :  { %v774_v24 = vpop.f32.mrf.mxu3  ;;  %v1091_v55 = vadd.f32 %v1704_v30, %v1025_v49  ;;  %v1090_v7 = vadd.f32 %v1704_v30, %v1016_v13  ;;  %v900_v9 = vmul.f32 %v1660_v8, %v812_v56  ;;  %v901_v23 = vmul.f32 %v1660_v8, %v813_v6 }
 0x188   :  { %v1038_v47 = vrot.slane %v1037_v3, 4  ;;  %v1030_v50 = vadd.f32 %v1029_v46, %v1028_v44  ;;  %v775_v40 = vadd.f32 %v774_v24, %v1646_v52 }
 0x189   :  { %1353 = vtanh.f32 %v1091_v55  ;;  %v1044_v26 = vadd.f32 %v900_v9, %v884_v19  ;;  %v1053_v42 = vadd.f32 %v901_v23, %v885_v20 }
 0x18a   :  { %v1039_v38 = vadd.f32 %v1038_v47, %v1037_v3  ;;  %v722_v51 = vpop.f32.mrf.mxu0  ;;  %v741_v58 = vpop.f32.mrf.mxu1  ;;  %v1031_v60 = vrot.slane %v1030_v50, 2  ;;  %1355 = vtanh.f32 %v1090_v7 }
 0x18b   :  { %v723_v57 = vadd.f32 %v722_v51, %v1648_v53  ;;  %v742_v0 = vadd.f32 %v741_v58, %v1648_v53 }
 0x18c   :  { %v1040_v63 = vrot.slane %v1039_v38, 2  ;;  %v1032_v54 = vadd.f32 %v1031_v60, %v1030_v50  ;;  %v798_v50 = vmax.f32 %v756_v39, 0.0 }
 0x18d   :  { %v828_v10 = vmax.f32 %v723_v57, 0.0  ;;  %v757_v43 = vpop.f32.mrf.mxu2  ;;  %v829_v18 = vmax.f32 %v742_v0, 0.0 }
 0x18e   :  { %v1041_v5 = vadd.f32 %v1040_v63, %v1039_v38  ;;  %v1033_v14 = vrot.slane %v1032_v54, 1  ;;  %v758_v15 = vadd.f32 %v757_v43, %v1650_v59  ;;  %v886_v55 = vmul.f32 %v1655_v1, %v798_v50 }
 0x18f   :  { %v776_v11 = vpop.f32.mrf.mxu3  ;;  %v916_v29 = vmul.f32 %v1663_v12, %v828_v10  ;;  %v917_v35 = vmul.f32 %v1663_v12, %v829_v18  ;;  %v1354_v32 = vpop.eup %1353 }
 0x190   :  { %v1042_v17 = vrot.slane %v1041_v5, 1  ;;  %v1034_v21 = vadd.f32 %v1033_v14, %v1032_v54  ;;  %v777_v44 = vadd.f32 %v776_v11, %v1650_v59  ;;  %v1356_v49 = vpop.eup %1355  ;;  %v814_v38 = vmax.f32 %v758_v15, 0.0 }
 0x191   :  { %v1045_v37 = vadd.f32 %v1044_v26, %v916_v29  ;;  %v1054_v48 = vadd.f32 %v1053_v42, %v917_v35  ;;  %v799_v59 = vmax.f32 %v775_v40, 0.0  ;;  %v1137_v56 = vrot.slane %v1354_v32, 7 }
 0x192   :  { %v1043_v22 = vadd.f32 %v1042_v17, %v1041_v5  ;;  %v724_v25 = vpop.f32.mrf.mxu0  ;;  %v743_v16 = vpop.f32.mrf.mxu1  ;;  %v1092_v33 = vadd.f32 %v1704_v30, %v1034_v21  ;;  %v815_v51 = vmax.f32 %v777_v44, 0.0  ;;  %v902_v54 = vmul.f32 %v1660_v8, %v814_v38 }
 0x193   :  { %v725_v31 = vadd.f32 %v724_v25, %v1652_v61  ;;  %v744_v36 = vadd.f32 %v743_v16, %v1652_v61  ;;  %v887_v6 = vmul.f32 %v1655_v1, %v799_v59  ;;  %v1158_v18 = vsel %vm1144_vm1, %v1356_v49, %v1137_v56 }
 0x194   :  { %v1093_v34 = vadd.f32 %v1704_v30, %v1043_v22  ;;  %1357 = vtanh.f32 %v1092_v33  ;;  %v903_v7 = vmul.f32 %v1660_v8, %v815_v51  ;;  %v1062_v1 = vadd.f32 %v902_v54, %v886_v55 }
 0x195   :  { %v844_v41 = vmax.f32 %v725_v31, 0.0  ;;  %v845_v3 = vmax.f32 %v744_v36, 0.0  ;;  %v760_v46 = vpop.f32.mrf.mxu2 }
 0x196   :  { %1359 = vtanh.f32 %v1093_v34  ;;  %v761_v52 = vadd.f32 %v760_v46, %v1648_v53  ;;  %v1071_v23 = vadd.f32 %v903_v7, %v887_v6 }
 0x197   :  { %v932_v27 = vmul.f32 %v1674_v28, %v844_v41  ;;  %v779_v47 = vpop.f32.mrf.mxu3  ;;  %v933_v45 = vmul.f32 %v1674_v28, %v845_v3 }
 0x198   :  { %v780_v24 = vadd.f32 %v779_v47, %v1648_v53  ;;  %v830_v58 = vmax.f32 %v761_v52, 0.0 }
 0x199   :  { %v1046_v62 = vadd.f32 %v1045_v37, %v932_v27  ;;  %v1055_v13 = vadd.f32 %v1054_v48, %v933_v45 }
 0x19a   :  { %v831_v60 = vmax.f32 %v780_v24, 0.0  ;;  %v1358_v63 = vpop.eup %1357  ;;  %v918_v43 = vmul.f32 %v1663_v12, %v830_v58 }
 0x19b   :  { %v1047_v57 = vrot.slane %v1046_v62, 4  ;;  %v1056_v0 = vrot.slane %v1055_v13, 4  ;;  %v1138_v4 = vrot.slane %v1358_v63, 6 }
 0x19c   :  { %v1360_v2 = vpop.eup %1359  ;;  %v919_v11 = vmul.f32 %v1663_v12, %v831_v60  ;;  %v1063_v12 = vadd.f32 %v1062_v1, %v918_v43 }
 0x19d   :  { %v1048_v53 = vadd.f32 %v1047_v57, %v1046_v62  ;;  %v1139_v5 = vrot.slane %v1360_v2, 5  ;;  %v1057_v9 = vadd.f32 %v1056_v0, %v1055_v13  ;;  %v762_v14 = vpop.f32.mrf.mxu2 }
 0x19e   :  { %v763_v20 = vadd.f32 %v762_v14, %v1652_v61  ;;  %v1072_v16 = vadd.f32 %v1071_v23, %v919_v11 }
 0x19f   :  { %v1049_v10 = vrot.slane %v1048_v53, 2  ;;  %v781_v17 = vpop.f32.mrf.mxu3  ;;  %v1058_v19 = vrot.slane %v1057_v9, 2  ;;  %v1159_v22 = vsel %vm1146_vm2, %v1138_v4, %v1139_v5 }
 0x1a0   :  { %v782_v21 = vadd.f32 %v781_v17, %v1652_v61  ;;  %v1160_v8 = vsel %vm1148_vm4, %v1158_v18, %v1159_v22  ;;  %v846_v26 = vmax.f32 %v763_v20, 0.0 }
 0x1a1   :  { %v1050_v25 = vadd.f32 %v1049_v10, %v1048_v53  ;;  %v1059_v31 = vadd.f32 %v1058_v19, %v1057_v9 }
 0x1a2   :  { %v847_v29 = vmax.f32 %v782_v21, 0.0  ;;  %v934_v33 = vmul.f32 %v1674_v28, %v846_v26 }
 0x1a3   :  { %v1051_v35 = vrot.slane %v1050_v25, 1  ;;  %v1060_v61 = vrot.slane %v1059_v31, 1 }
 0x1a4   :  { %v935_v34 = vmul.f32 %v1674_v28, %v847_v29  ;;  %v1064_v36 = vadd.f32 %v1063_v12, %v934_v33 }
 0x1a5   :  { %v1052_v41 = vadd.f32 %v1051_v35, %v1050_v25  ;;  %v1061_v3 = vadd.f32 %v1060_v61, %v1059_v31 }
 0x1a6   :  { %v1073_v39 = vadd.f32 %v1072_v16, %v935_v34  ;;  %v1065_v40 = vrot.slane %v1064_v36, 4 }
 0x1a7   :  { %v1094_v46 = vadd.f32 %v1704_v30, %v1052_v41  ;;  %v1095_v48 = vadd.f32 %v1704_v30, %v1061_v3 }
 0x1a8   :  { %v1074_v15 = vrot.slane %v1073_v39, 4  ;;  %v1066_v42 = vadd.f32 %v1065_v40, %v1064_v36 }
 0x1a9   :  { %1361 = vtanh.f32 %v1094_v46 }
 0x1aa   :  { %v1075_v44 = vadd.f32 %v1074_v15, %v1073_v39  ;;  %v1067_v37 = vrot.slane %v1066_v42, 2  ;;  %1363 = vtanh.f32 %v1095_v48 }
 0x1ac   :  { %v1076_v27 = vrot.slane %v1075_v44, 2  ;;  %v1068_v47 = vadd.f32 %v1067_v37, %v1066_v42 }
 0x1ae   :  { %v1077_v32 = vadd.f32 %v1076_v27, %v1075_v44  ;;  %v1069_v45 = vrot.slane %v1068_v47, 1 }
 0x1af   :  { %v1362_v38 = vpop.eup %1361 }
 0x1b0   :  { %v1078_v28 = vrot.slane %v1077_v32, 1  ;;  %v1070_v52 = vadd.f32 %v1069_v45, %v1068_v47  ;;  %v1364_v62 = vpop.eup %1363  ;;  %v1140_v51 = vrot.slane %v1362_v38, 4 }
 0x1b1   :  { %v1141_v13 = vrot.slane %v1364_v62, 3 }
 0x1b2   :  { %v1079_v24 = vadd.f32 %v1078_v28, %v1077_v32  ;;  %v1096_v49 = vadd.f32 %v1704_v30, %v1070_v52 }
 0x1b3   :  { %v1161_v60 = vsel %vm1150_vm3, %v1140_v51, %v1141_v13 }
 0x1b4   :  { %v1097_v50 = vadd.f32 %v1704_v30, %v1079_v24  ;;  %1365 = vtanh.f32 %v1096_v49 }
 0x1b6   :  { %1367 = vtanh.f32 %v1097_v50 }
 0x1ba   :  { %v1366_v59 = vpop.eup %1365 }
 0x1bb   :  { %v1142_v57 = vrot.slane %v1366_v59, 2 }
 0x1bc   :  { %v1368_v56 = vpop.eup %1367 }
 0x1bd   :  { %v1143_v58 = vrot.slane %v1368_v56, 1 }
 0x1bf   :  { %v1162_v30 = vsel %vm1152_vm5, %v1142_v57, %v1143_v58 }
 0x1c0   :  { %v1163_v63 = vsel %vm1154_vm6, %v1161_v60, %v1162_v30 }
 0x1c1   :  { %v1164_v0 = vsel %vm1156_vm7, %v1160_v8, %v1163_v63 }
 0x1c2   :  { %1168 = vst [vmem:[#allocation6 + $0x8] sm:$0xff] %v1164_v0 }
 0x1c3   :  { %1179 = dma.vmem_to_hbm [thread:$0]  %s1175_s30, 256, %s1177_s0, [#allocation5]  }
 0x1c4   :  { %1419 = dma.done.wait [#allocation5], 256  }
 0x1c5   :  { %1420 = vsyncadd [#allocation5], 4294967040 }
 0x1c6   :  { %1184 = vsyncpa [#allocation4], 1 }
 0x1c7   :  { %1185 = vsyncpa [#allocation5], 1 }

</bundles_post_ra>
